<compile_context>
chip_gen: v7x
topology: tpu7x:2x2x1
jax: 0.10.0
libtpu: 0.0.40
codegen_flags: <defaults>
</compile_context>

<pallas_src>
import functools

import jax
import jax.numpy as jnp
from jax import lax
from jax.experimental import pallas as pl
from jax.experimental.pallas import tpu as pltpu


def _round_up(x, m):
    return ((x + m - 1) // m) * m


def _pick_tile(size, unit, cap):
    """Pad `size` tightly to a multiple of `unit`; pick the largest tile that is a
    multiple of `unit`, <= cap, and divides the padded size (no overshoot)."""
    p = _round_up(size, unit)
    cap = max(unit, (cap // unit) * unit)
    best = unit
    t = unit
    while t <= min(p, cap):
        if p % t == 0:
            best = t
        t += unit
    return p, best


# ----------------------------- parameters ------------------------------------

DOUT_BASE = 32       # dout_base_model (toy; production backbones use >=128)
N_ANCHORS = 3
N_CLASSES = 3 + 1    # classes + 1 (background)
HIDDEN = 64
POOLED = 7
FEAT_STRIDE = 16


# ----------------------- tiled linear (bf16 MXU matmul) ----------------------

def _linear_kernel(x_ref, w_ref, b_ref, o_ref, acc_ref, *, activation):
    @pl.when(pl.program_id(2) == 0)
    def _init():
        acc_ref[...] = jnp.zeros_like(acc_ref)

    acc_ref[...] += jnp.dot(x_ref[...], w_ref[...],
                            preferred_element_type=jnp.float32)

    @pl.when(pl.program_id(2) == pl.num_programs(2) - 1)
    def _finalize():
        out = acc_ref[...] + b_ref[...]          # f32 epilogue (v5e has no bf16 VPU)
        if activation == "relu":
            out = jnp.maximum(out, 0.0)
        o_ref[...] = out.astype(o_ref.dtype)


def pallas_linear(x, w, b, activation="none", out_dtype=jnp.float32,
                  tm_cap=512, tn_cap=512, tk_cap=1024):
    """o = act(x @ w + b), tiled + pipelined, bf16 MXU inputs, f32 accumulate.

    `w`/`b` may already be packed (bf16, K padded to a 128 multiple, bias (1,N)
    f32); in that case no per-call weight pad/cast happens."""
    M, K = x.shape
    N = w.shape[1]
    Mp, tm = _pick_tile(M, 8, tm_cap)
    Kp, tk = _pick_tile(K, 128, tk_cap)
    if N < 128:                       # small N: full-dim lane tile, no pad traffic
        Np, tn = N, N
    else:
        Np, tn = _pick_tile(N, 128, tn_cap)

    xp = x if x.dtype == jnp.bfloat16 else x.astype(jnp.bfloat16)
    if (Mp, Kp) != (M, K):
        xp = jnp.pad(xp, ((0, Mp - M), (0, Kp - K)))
    wp = w if w.dtype == jnp.bfloat16 else w.astype(jnp.bfloat16)
    if wp.shape != (Kp, Np):
        wp = jnp.pad(wp, ((0, Kp - wp.shape[0]), (0, Np - wp.shape[1])))
    if b.ndim == 2 and b.shape == (1, Np) and b.dtype == jnp.float32:
        bp = b
    else:
        bb = b.reshape(-1).astype(jnp.float32)
        bp = jnp.pad(bb, (0, Np - bb.shape[0])).reshape(1, Np)

    grid = (Mp // tm, Np // tn, Kp // tk)
    # TODO(synk): if the K-loop DMA is still exposed at production sizes, add
    # pipeline_mode=pl.Buffered(3) on the x/w BlockSpecs.
    out = pl.pallas_call(
        functools.partial(_linear_kernel, activation=activation),
        grid_spec=pltpu.PrefetchScalarGridSpec(
            num_scalar_prefetch=0,
            grid=grid,
            in_specs=[
                pl.BlockSpec((tm, tk), lambda i, j, k: (i, k)),
                pl.BlockSpec((tk, tn), lambda i, j, k: (k, j)),
                pl.BlockSpec((1, tn), lambda i, j, k: (0, j)),
            ],
            out_specs=pl.BlockSpec((tm, tn), lambda i, j, k: (i, j)),
            scratch_shapes=[pltpu.VMEM((tm, tn), jnp.float32)],
        ),
        out_shape=jax.ShapeDtypeStruct((Mp, Np), out_dtype),
        compiler_params=pltpu.CompilerParams(
            dimension_semantics=("parallel", "parallel", "arbitrary"),
            vmem_limit_bytes=64 * 1024 * 1024),
    )(xp, wp, bp)
    return out[:M, :N]


# ------- fused 3x3 stride-1 RPN conv + 1x1 RPN cls/bbox head (no im2col) -----

def _rpn_fused_kernel(x_ref, cw_ref, cb_ref, hw_ref, hb_ref, o_ref, *, TH, OW, Cin):
    t = pl.program_id(1)
    row0 = pl.multiple_of(t * TH, TH)
    feat = x_ref[0, pl.ds(row0, TH + 2), :, :]          # (TH+2, OW+2, Cin) bf16
    # Fold the 9 taps into the MXU contraction dim: one dot with K = 9*Cin
    cols = []
    for i in range(3):
        for j in range(3):
            cols.append(feat[i:i + TH, j:j + OW, :])
    patch = jnp.concatenate(cols, axis=-1).reshape(TH * OW, 9 * Cin)
    conv = jnp.dot(patch, cw_ref[...], preferred_element_type=jnp.float32)
    conv = jnp.maximum(conv + cb_ref[...], 0.0)         # f32 bias + ReLU epilogue
    # Fused RPN 1x1 cls/bbox head: rpn_feat never round-trips through HBM
    head = jnp.dot(conv.astype(jnp.bfloat16), hw_ref[...],
                   preferred_element_type=jnp.float32) + hb_ref[...]
    o_ref[0] = head.reshape(TH, OW, hw_ref.shape[1]).astype(o_ref.dtype)


def pallas_rpn_fused(feature, conv_w, conv_b, head_w, head_b, row_tile=32):
    """3x3 stride-1 pad-1 conv + ReLU + fused 1x1 cls/bbox head.
    Returns (B, H, W, Npad) with the first 2A+4A lanes valid (lane-dense store)."""
    B, H, W, Cin = feature.shape
    Np = head_w.shape[1]
    xp = jnp.pad(feature.astype(jnp.bfloat16), ((0, 0), (1, 1), (1, 1), (0, 0)))
    th = 1
    for cand in range(1, min(row_tile, H) + 1):         # largest divisor of H <= row_tile
        if H % cand == 0:
            th = cand
    return pl.pallas_call(
        functools.partial(_rpn_fused_kernel, TH=th, OW=W, Cin=Cin),
        grid_spec=pltpu.PrefetchScalarGridSpec(
            num_scalar_prefetch=0,
            grid=(B, H // th),
            in_specs=[
                pl.BlockSpec((1, H + 2, W + 2, Cin), lambda n, t: (n, 0, 0, 0)),
                pl.BlockSpec((9 * Cin, conv_w.shape[1]), lambda n, t: (0, 0)),
                pl.BlockSpec((1, conv_b.shape[1]), lambda n, t: (0, 0)),
                pl.BlockSpec((conv_w.shape[1], Np), lambda n, t: (0, 0)),
                pl.BlockSpec((1, Np), lambda n, t: (0, 0)),
            ],
            out_specs=pl.BlockSpec((1, th, W, Np), lambda n, t: (n, t, 0, 0)),
        ),
        out_shape=jax.ShapeDtypeStruct((B, H, W, Np), jnp.float32),
        compiler_params=pltpu.CompilerParams(
            dimension_semantics=("parallel", "parallel")),
    )(xp, conv_w, conv_b, head_w, head_b)


# ----------------------------- ROI max pooling -------------------------------

def _roi_pool_kernel(coords_ref, feat_ref, out_ref, *, H, W, C, pooled, scale, K, R):
    b = pl.program_id(0)
    feat = feat_ref[0]                                  # (H, W, C), resident per batch
    neg = jnp.float32(-jnp.inf)
    hidx = lax.broadcasted_iota(jnp.int32, (H, 1, 1), 0).astype(jnp.float32)
    widx = lax.broadcasted_iota(jnp.int32, (1, W, 1), 1).astype(jnp.float32)

    chunks = []
    for k in range(K):                                  # all K ROIs of this image
        r = b * K + k
        # torch-style round-half-away-from-zero (coords are non-negative)
        roi_start_w = jnp.floor(coords_ref[0 * R + r] * scale + 0.5)
        roi_start_h = jnp.floor(coords_ref[1 * R + r] * scale + 0.5)
        roi_end_w = jnp.floor(coords_ref[2 * R + r] * scale + 0.5)
        roi_end_h = jnp.floor(coords_ref[3 * R + r] * scale + 0.5)
        roi_w = jnp.maximum(roi_end_w - roi_start_w + 1.0, 1.0)
        roi_h = jnp.maximum(roi_end_h - roi_start_h + 1.0, 1.0)
        bin_w = roi_w / float(pooled)
        bin_h = roi_h / float(pooled)

        # stage 1: reduce rows once per ph  -> (pooled, W, C)
        rows = []
        for ph in range(pooled):
            hstart = jnp.clip(jnp.floor(ph * bin_h) + roi_start_h, 0.0, float(H))
            hend = jnp.clip(jnp.ceil((ph + 1) * bin_h) + roi_start_h, 0.0, float(H))
            maskh = (hidx >= hstart) & (hidx < hend)
            rows.append(jnp.max(jnp.where(maskh, feat, neg), axis=0))
        rows = jnp.stack(rows, axis=0)

        # stage 2: reduce columns once per pw -> (pooled, pooled, C)
        cols = []
        for pw in range(pooled):
            wstart = jnp.clip(jnp.floor(pw * bin_w) + roi_start_w, 0.0, float(W))
            wend = jnp.clip(jnp.ceil((pw + 1) * bin_w) + roi_start_w, 0.0, float(W))
            maskw = (widx >= wstart) & (widx < wend)
            cols.append(jnp.max(jnp.where(maskw, rows, neg), axis=1))
        vals = jnp.stack(cols, axis=1)                  # (pooled, pooled, C)

        vals = jnp.where(vals == neg, 0.0, vals)        # empty bins -> 0
        chunks.append(vals.reshape(pooled * pooled, C))

    out_ref[0] = jnp.concatenate(chunks, axis=0)        # one slab store per image


def pallas_roi_pool(feature, rois, pooled=7, scale=1.0 / 16.0):
    """feature: (B,H,W,C) NHWC; rois: (B,K,5) [batch_idx,x1,y1,x2,y2], batch-ordered
    (batch index == leading axis).  Returns (B*K, pooled*pooled, C)."""
    # TODO(synk): for production channel counts (C=512+) add a channel grid axis
    # (BlockSpec (1,H,W,128)) to keep the per-image block small on v7x's 64 MiB VMEM.
    B, H, W, C = feature.shape
    K = rois.shape[1]
    R = B * K
    # flat 1-D SMEM coords: [x1...(R), y1...(R), x2...(R), y2...(R)] -> no 2-D SMEM padding
    coords = rois[..., 1:5].reshape(R, 4).astype(jnp.float32).T.reshape(-1)
    out = pl.pallas_call(
        functools.partial(_roi_pool_kernel, H=H, W=W, C=C,
                          pooled=pooled, scale=scale, K=K, R=R),
        grid_spec=pltpu.PrefetchScalarGridSpec(
            num_scalar_prefetch=1,
            grid=(B,),
            in_specs=[pl.BlockSpec((1, H, W, C), lambda b, coords: (b, 0, 0, 0))],
            out_specs=pl.BlockSpec((1, K * pooled * pooled, C),
                                   lambda b, coords: (b, 0, 0)),
        ),
        out_shape=jax.ShapeDtypeStruct((B, K * pooled * pooled, C), jnp.float32),
        compiler_params=pltpu.CompilerParams(dimension_semantics=("parallel",)),
    )(coords, feature)
    return out.reshape(B * K, pooled * pooled, C)


# ---------------- fused RCNN head (cls softmax + bbox), lane-dense -----------

def _rcnn_head_kernel(x_ref, w_ref, b_ref, o_ref, *, n_cls):
    acc = jnp.dot(x_ref[...], w_ref[...], preferred_element_type=jnp.float32)
    acc = acc + b_ref[...]
    # softmax over the first n_cls lanes via an iota mask (no lane-offset slicing,
    # single lane-dense store; wrapper splits cls/bbox).
    col = lax.broadcasted_iota(jnp.int32, acc.shape, 1)
    is_cls = col < n_cls
    logits = jnp.where(is_cls, acc, jnp.float32(-jnp.inf))
    m = jnp.max(logits, axis=-1, keepdims=True)
    e = jnp.where(is_cls, jnp.exp(acc - m), 0.0)
    s = jnp.sum(e, axis=-1, keepdims=True)
    # approx reciprocal: probabilities sum to ~1 (tiny deviation from exact softmax)
    prob = e * pl.reciprocal(s, approx=True)
    o_ref[...] = jnp.where(is_cls, prob, acc).astype(o_ref.dtype)


def pallas_rcnn_head(feat, w_packed, b_packed, n_cls, n_bbox):
    M, K = feat.shape
    Mp = _round_up(M, 8)
    x = feat if feat.dtype == jnp.bfloat16 else feat.astype(jnp.bfloat16)
    if Mp != M:
        x = jnp.pad(x, ((0, Mp - M), (0, 0)))
    Np = w_packed.shape[1]
    out = pl.pallas_call(
        functools.partial(_rcnn_head_kernel, n_cls=n_cls),
        out_shape=jax.ShapeDtypeStruct((Mp, Np), jnp.float32),
        in_specs=[pl.BlockSpec((Mp, K), lambda: (0, 0)),
                  pl.BlockSpec((K, Np), lambda: (0, 0)),
                  pl.BlockSpec((1, Np), lambda: (0, 0))],
        out_specs=pl.BlockSpec((Mp, Np), lambda: (0, 0)),
    )(x, w_packed, b_packed)
    return out[:M, :n_cls], out[:M, n_cls:n_cls + n_bbox]


# ------------------------------ JAX glue -------------------------------------

def im2col(x_nhwc, kh, kw, stride, pad):
    N, H, W, C = x_nhwc.shape
    xp = jnp.pad(x_nhwc, ((0, 0), (pad, pad), (pad, pad), (0, 0)))
    Hp, Wp = H + 2 * pad, W + 2 * pad
    out_h = (Hp - kh) // stride + 1
    out_w = (Wp - kw) // stride + 1
    cols = []
    for i in range(kh):
        for j in range(kw):
            cols.append(xp[:, i:i + stride * out_h:stride,
                           j:j + stride * out_w:stride, :])
    patches = jnp.concatenate(cols, axis=-1)
    return patches.reshape(N * out_h * out_w, kh * kw * C), out_h, out_w


def conv2d_im2col(x_nhwc, w_packed, b_packed, cout, kh=3, kw=3, stride=1, pad=1,
                  activation="none"):
    # Only used for the stride-16 base conv (no data expansion at that stride).
    N = x_nhwc.shape[0]
    patches, oh, ow = im2col(x_nhwc, kh, kw, stride, pad)
    out = pallas_linear(patches, w_packed, b_packed, activation=activation)
    return out[:, :cout].reshape(N, oh, ow, cout)


def make_anchors(Hf, Wf, feat_stride, scales):
    ys = (jnp.arange(Hf, dtype=jnp.float32) + 0.5) * feat_stride
    xs = (jnp.arange(Wf, dtype=jnp.float32) + 0.5) * feat_stride
    cy, cx = jnp.meshgrid(ys, xs, indexing="ij")
    half = jnp.asarray(scales, jnp.float32) * feat_stride / 2.0
    x1 = cx[:, :, None] - half
    y1 = cy[:, :, None] - half
    x2 = cx[:, :, None] + half
    y2 = cy[:, :, None] + half
    return jnp.stack([x1, y1, x2, y2], axis=-1).reshape(-1, 4)


def bbox_transform_inv(boxes, deltas):
    w = boxes[..., 2] - boxes[..., 0] + 1.0
    h = boxes[..., 3] - boxes[..., 1] + 1.0
    cx = boxes[..., 0] + 0.5 * w
    cy = boxes[..., 1] + 0.5 * h
    dx, dy, dw, dh = (deltas[..., 0], deltas[..., 1], deltas[..., 2], deltas[..., 3])
    pcx = dx * w + cx
    pcy = dy * h + cy
    pw = jnp.exp(dw) * w
    ph = jnp.exp(dh) * h
    return jnp.stack([pcx - 0.5 * pw, pcy - 0.5 * ph,
                      pcx + 0.5 * pw - 1.0, pcy + 0.5 * ph - 1.0], axis=-1)


# ----------------------------- init & packing --------------------------------

def init_params(key):
    ks = jax.random.split(key, 8)

    def nrm(k, shape, std):
        return jax.random.normal(k, shape, jnp.float32) * std

    return {
        # synthetic RCNN_base: one 3x3 stride-16 conv (gives the /16 feature map)
        "base_w": nrm(ks[0], (3, 3, 3, DOUT_BASE), 0.01),
        "base_b": jnp.zeros((DOUT_BASE,), jnp.float32),
        # RPN
        "rpn_conv_w": nrm(ks[1], (3, 3, DOUT_BASE, DOUT_BASE), 0.01),
        "rpn_conv_b": jnp.zeros((DOUT_BASE,), jnp.float32),
        "rpn_cls_w": nrm(ks[2], (DOUT_BASE, 2 * N_ANCHORS), 0.01),
        "rpn_cls_b": jnp.zeros((2 * N_ANCHORS,), jnp.float32),
        "rpn_bbox_w": nrm(ks[3], (DOUT_BASE, 4 * N_ANCHORS), 0.01),
        "rpn_bbox_b": jnp.zeros((4 * N_ANCHORS,), jnp.float32),
        # synthetic _head_to_tail: FC + ReLU over flattened 7x7 pooled features
        "head_w": nrm(ks[4], (POOLED * POOLED * DOUT_BASE, HIDDEN), 0.01),
        "head_b": jnp.zeros((HIDDEN,), jnp.float32),
        # RCNN heads
        "cls_w": nrm(ks[5], (HIDDEN, N_CLASSES), 0.01),
        "cls_b": jnp.zeros((N_CLASSES,), jnp.float32),
        "bbox_w": nrm(ks[6], (HIDDEN, 4 * N_CLASSES), 0.001),
        "bbox_b": jnp.zeros((4 * N_CLASSES,), jnp.float32),
    }


def pack_params(params):
    """One-time static weight packing: bf16 cast, 128-multiple K padding, head
    fusion and lane padding -- per-forward wrappers do no weight pad/cast work."""
    def pad_k(w2d):
        K = w2d.shape[0]
        Kp = _round_up(K, 128)
        return jnp.pad(w2d.astype(jnp.bfloat16), ((0, Kp - K), (0, 0)))

    def bias_row(b, n):
        return jnp.pad(b.astype(jnp.float32), (0, n - b.shape[0])).reshape(1, n)

    p = {}
    # base conv folded to an im2col matmul weight (27 -> 128, DOUT_BASE)
    p["base_w"] = pad_k(params["base_w"].reshape(9 * 3, DOUT_BASE))
    p["base_b"] = bias_row(params["base_b"], DOUT_BASE)
    # RPN conv: 9 taps folded into K (one K=9*Cin MXU dot in the fused kernel)
    p["rpn_conv_w"] = params["rpn_conv_w"].reshape(
        9 * DOUT_BASE, DOUT_BASE).astype(jnp.bfloat16)
    p["rpn_conv_b"] = bias_row(params["rpn_conv_b"], DOUT_BASE)
    # RPN cls/bbox heads fused + padded to a lane-dense 128-wide output
    hw = jnp.concatenate([params["rpn_cls_w"], params["rpn_bbox_w"]], axis=1)
    hb = jnp.concatenate([params["rpn_cls_b"], params["rpn_bbox_b"]])
    npad = _round_up(hw.shape[1], 128)
    p["rpn_head_w"] = jnp.pad(hw.astype(jnp.bfloat16), ((0, 0), (0, npad - hw.shape[1])))
    p["rpn_head_b"] = bias_row(hb, npad)
    # _head_to_tail FC
    p["head_w"] = pad_k(params["head_w"])
    p["head_b"] = bias_row(params["head_b"], HIDDEN)
    # RCNN cls/bbox heads fused + padded lane-dense
    rw = jnp.concatenate([params["cls_w"], params["bbox_w"]], axis=1)
    rb = jnp.concatenate([params["cls_b"], params["bbox_b"]])
    npad2 = _round_up(rw.shape[1], 128)
    p["rcnn_w"] = jnp.pad(rw.astype(jnp.bfloat16), ((0, 0), (0, npad2 - rw.shape[1])))
    p["rcnn_b"] = bias_row(rb, npad2)
    return p


# ----------------------------- forward pass ----------------------------------

def faster_forward(packed, im_data, im_info, gt_boxes, num_boxes,
                   anchor_scales=(2.0, 4.0, 8.0), post_top_n=8):
    """Eval-mode forward of the `faster` module (training branch omitted)."""
    del gt_boxes, num_boxes  # only used by the training branch
    B = im_data.shape[0]
    x = jnp.transpose(im_data, (0, 2, 3, 1))  # NCHW -> NHWC

    # RCNN_base (stride-16 conv + ReLU)
    feature = conv2d_im2col(x, packed["base_w"], packed["base_b"], DOUT_BASE,
                            stride=FEAT_STRIDE, pad=1, activation="relu")
    _, Hf, Wf, D = feature.shape

    # Fused RPN: 3x3 conv + ReLU + 1x1 cls/bbox head, no rpn_feat HBM round trip.
    rpn_raw = pallas_rpn_fused(feature, packed["rpn_conv_w"], packed["rpn_conv_b"],
                               packed["rpn_head_w"], packed["rpn_head_b"])
    rpn_flat = rpn_raw.reshape(B, Hf * Wf, -1)
    rpn_cls = rpn_flat[..., :2 * N_ANCHORS]
    rpn_bbox = rpn_flat[..., 2 * N_ANCHORS:6 * N_ANCHORS]
    # binary softmax == sigmoid of the logit difference, on the lane-dense layout.
    # NOTE: assumes interleaved [bg_a0, fg_a0, ...] columns / (H,W,A) anchor order;
    # porting real torch weights requires a column permutation.
    fg_scores = jax.nn.sigmoid(rpn_cls[..., 1::2] - rpn_cls[..., 0::2])
    fg_scores = fg_scores.reshape(B, Hf * Wf * N_ANCHORS)
    deltas = rpn_bbox.reshape(B, Hf * Wf * N_ANCHORS, 4)

    anchors = make_anchors(Hf, Wf, FEAT_STRIDE, anchor_scales)   # (HWA, 4)
    proposals = bbox_transform_inv(anchors[None], deltas)        # (B, HWA, 4)
    im_h = im_info[:, 0][:, None]
    im_w = im_info[:, 1][:, None]
    proposals = jnp.stack([
        jnp.clip(proposals[..., 0], 0.0, im_w - 1.0),
        jnp.clip(proposals[..., 1], 0.0, im_h - 1.0),
        jnp.clip(proposals[..., 2], 0.0, im_w - 1.0),
        jnp.clip(proposals[..., 3], 0.0, im_h - 1.0),
    ], axis=-1)

    # TODO(synk): NMS in the RPN proposal layer has no clean Pallas equivalent;
    # proposals are ranked by foreground score and the top-K are kept instead.
    _, top_idx = lax.top_k(fg_scores, post_top_n)                          # (B, K)
    top_boxes = jnp.take_along_axis(proposals, top_idx[:, :, None], axis=1)
    batch_col = jnp.broadcast_to(
        jnp.arange(B, dtype=jnp.float32)[:, None, None], (B, post_top_n, 1))
    rois = jnp.concatenate([batch_col, top_boxes], axis=-1)                # (B, K, 5)

    rpn_loss_cls = jnp.float32(0.0)    # eval mode
    rpn_loss_bbox = jnp.float32(0.0)

    # RCNN_roi_pool(7, 7, 1/16) -- grid = (B,), K ROIs per resident feature map
    pooled = pallas_roi_pool(feature, rois, pooled=POOLED, scale=1.0 / 16.0)

    # _head_to_tail (bf16 output feeds the bf16 head directly) + fused RCNN head
    pooled_flat = pooled.reshape(B * post_top_n, -1)
    pooled_feat = pallas_linear(pooled_flat, packed["head_w"], packed["head_b"],
                                activation="relu", out_dtype=jnp.bfloat16)
    cls_prob, bbox_pred = pallas_rcnn_head(pooled_feat, packed["rcnn_w"],
                                           packed["rcnn_b"],
                                           n_cls=N_CLASSES, n_bbox=4 * N_CLASSES)

    RCNN_loss_cls = jnp.float32(0.0)   # eval mode
    RCNN_loss_bbox = jnp.float32(0.0)
    rois_label = None                  # eval mode

    cls_prob = cls_prob.reshape(B, post_top_n, -1)
    bbox_pred = bbox_pred.reshape(B, post_top_n, -1)

    return (rois, cls_prob, bbox_pred, rpn_loss_cls, rpn_loss_bbox,
            RCNN_loss_cls, RCNN_loss_bbox, rois_label)


# --------------------------------- main ---------------------------------------

if __name__ == "__main__":
    key = jax.random.PRNGKey(0)
    k_img, k_par = jax.random.split(key, 2)

    B, C, H, W = 2, 3, 64, 64
    im_data = jax.random.normal(k_img, (B, C, H, W), jnp.float32)
    im_info = jnp.tile(jnp.array([[float(H), float(W), 1.0]], jnp.float32), (B, 1))
    gt_boxes = jnp.zeros((B, 20, 5), jnp.float32)
    num_boxes = jnp.zeros((B,), jnp.int32)

    params = init_params(k_par)
    packed = pack_params(params)       # one-time weight packing (bf16 + padding)
    outs = faster_forward(packed, im_data, im_info, gt_boxes, num_boxes)
    jax.block_until_ready([o for o in outs if o is not None])

    rois, cls_prob, bbox_pred = outs[0], outs[1], outs[2]
    assert rois.shape == (2, 8, 5)
    assert cls_prob.shape == (2, 8, N_CLASSES)
    assert bbox_pred.shape == (2, 8, 4 * N_CLASSES)
    print("KERNEL_OK")
</pallas_src>

<mosaic_0001>
module attributes {stable_mosaic.version = 11 : i64} {
  func.func @_linear_kernel(%arg0: i32, %arg1: i32, %arg2: i32, %arg3: memref<32x128xbf16, #tpu.memory_space<vmem>>, %arg4: memref<128x32xbf16, #tpu.memory_space<vmem>>, %arg5: memref<1x32xf32, #tpu.memory_space<vmem>>, %arg6: memref<32x32xf32, #tpu.memory_space<vmem>>, %arg7: memref<32x32xf32, #tpu.memory_space<vmem>>) attributes {dimension_semantics = [#tpu.dimension_semantics<parallel>, #tpu.dimension_semantics<parallel>, #tpu.dimension_semantics<arbitrary>], iteration_bounds = array<i64: 1, 1, 1>, scalar_prefetch = 0 : i64, scratch_operands = 1 : i64, tpu.core_type = #tpu.core_type<tc>, window_params = [{transform_indices = @transform_0, window_bounds = array<i64: 32, 128>}, {transform_indices = @transform_1, window_bounds = array<i64: 128, 32>}, {transform_indices = @transform_2, window_bounds = array<i64: 1, 32>}, {transform_indices = @transform_3, window_bounds = array<i64: 32, 32>}]} {
    %c0_i32 = arith.constant 0 : i32
    %0 = arith.cmpi eq, %arg2, %c0_i32 : i32
    %1 = arith.extui %0 : i1 to i32
    %c0_i32_0 = arith.constant 0 : i32
    %2 = arith.cmpi ne, %1, %c0_i32_0 : i32
    scf.if %2 {
      %cst_10 = arith.constant 0.000000e+00 : f32
      %12 = vector.broadcast %cst_10 : f32 to vector<32x32xf32>
      %c0_11 = arith.constant 0 : index
      %c0_12 = arith.constant 0 : index
      %13 = vector.load %arg7[%c0_11, %c0_12] : memref<32x32xf32, #tpu.memory_space<vmem>>, vector<32x32xf32>
      tpu.vector_store %arg7[%c0_11, %c0_12], %12 {strides = array<i32>} : memref<32x32xf32, #tpu.memory_space<vmem>>, vector<32x32xf32>,
    } else {
    }
    %c0 = arith.constant 0 : index
    %c0_1 = arith.constant 0 : index
    %3 = vector.load %arg7[%c0, %c0_1] : memref<32x32xf32, #tpu.memory_space<vmem>>, vector<32x32xf32>
    %c0_2 = arith.constant 0 : index
    %c0_3 = arith.constant 0 : index
    %4 = vector.load %arg3[%c0_2, %c0_3] : memref<32x128xbf16, #tpu.memory_space<vmem>>, vector<32x128xbf16>
    %c0_4 = arith.constant 0 : index
    %c0_5 = arith.constant 0 : index
    %5 = vector.load %arg4[%c0_4, %c0_5] : memref<128x32xbf16, #tpu.memory_space<vmem>>, vector<128x32xbf16>
    %cst = arith.constant dense<0.000000e+00> : vector<32x32xf32>
    %6 = tpu.matmul %4, %5, %cst {dimension_numbers = #tpu.dot_dimension_numbers<[1], [0], [0], [1], [0, 0, 1, 1], [], []>} : vector<32x128xbf16>, vector<128x32xbf16>, vector<32x32xf32> -> vector<32x32xf32>
    %7 = arith.addf %3, %6 : vector<32x32xf32>
    %c0_6 = arith.constant 0 : index
    %c0_7 = arith.constant 0 : index
    %8 = vector.load %arg7[%c0_6, %c0_7] : memref<32x32xf32, #tpu.memory_space<vmem>>, vector<32x32xf32>
    tpu.vector_store %arg7[%c0_6, %c0_7], %7 {strides = array<i32>} : memref<32x32xf32, #tpu.memory_space<vmem>>, vector<32x32xf32>,
    %c0_i32_8 = arith.constant 0 : i32
    %9 = arith.cmpi eq, %arg2, %c0_i32_8 : i32
    %10 = arith.extui %9 : i1 to i32
    %c0_i32_9 = arith.constant 0 : i32
    %11 = arith.cmpi ne, %10, %c0_i32_9 : i32
    scf.if %11 {
      %c0_10 = arith.constant 0 : index
      %c0_11 = arith.constant 0 : index
      %12 = vector.load %arg7[%c0_10, %c0_11] : memref<32x32xf32, #tpu.memory_space<vmem>>, vector<32x32xf32>
      %c0_12 = arith.constant 0 : index
      %c0_13 = arith.constant 0 : index
      %13 = vector.load %arg5[%c0_12, %c0_13] : memref<1x32xf32, #tpu.memory_space<vmem>>, vector<1x32xf32>
      %14 = vector.broadcast %13 : vector<1x32xf32> to vector<32x32xf32>
      %15 = arith.addf %12, %14 : vector<32x32xf32>
      %cst_14 = arith.constant 0.000000e+00 : f32
      %16 = vector.broadcast %cst_14 : f32 to vector<32x32xf32>
      %17 = arith.maximumf %15, %16 : vector<32x32xf32>
      %c0_15 = arith.constant 0 : index
      %c0_16 = arith.constant 0 : index
      %18 = vector.load %arg6[%c0_15, %c0_16] : memref<32x32xf32, #tpu.memory_space<vmem>>, vector<32x32xf32>
      tpu.vector_store %arg6[%c0_15, %c0_16], %17 {strides = array<i32>} : memref<32x32xf32, #tpu.memory_space<vmem>>, vector<32x32xf32>,
    } else {
    }
    return
  }
  func.func @transform_0(%arg0: i32, %arg1: i32, %arg2: i32) -> (i32, i32) {
    %c0_i32 = arith.constant 0 : i32
    return %arg0, %arg2 : i32, i32
  }
  func.func @transform_1(%arg0: i32, %arg1: i32, %arg2: i32) -> (i32, i32) {
    %c0_i32 = arith.constant 0 : i32
    return %arg2, %arg1 : i32, i32
  }
  func.func @transform_2(%arg0: i32, %arg1: i32, %arg2: i32) -> (i32, i32) {
    %c0_i32 = arith.constant 0 : i32
    %c0_i32_0 = arith.constant 0 : i32
    return %c0_i32, %arg1 : i32, i32
  }
  func.func @transform_3(%arg0: i32, %arg1: i32, %arg2: i32) -> (i32, i32) {
    %c0_i32 = arith.constant 0 : i32
    return %arg0, %arg1 : i32, i32
  }
}

</mosaic_0001>

<bundles_post_ra>
// kernel: tpu_custom_call.1
= control target key start
LH: loop header
LB: loop body
LE: loop exit
PB: predicated region body
PF: predicated region fallthrough
CT: control target
= control target key end

     0   :  { %8 = vsyncpa [#allocation4], 0  ;;  %s500_s0 = inlined_call_operand.hbm [shape: bf16[32,128], index: 0, kind: input, shape index: {}]   ;;  %s501_s1 = inlined_call_operand.hbm [shape: bf16[128,32], index: 1, kind: input, shape index: {}]   ;;  %s502_s2 = inlined_call_operand.hbm [shape: f32[1,32], index: 2, kind: input, shape index: {}]   ;;  %s503_s3 = inlined_call_operand.hbm [shape: f32[32,32], index: 3, kind: output, shape index: {}]  }
   0x1   :  { %9 = vsyncpa [#allocation7], 0 }
   0x2   :  { %10 = vsyncpa [#allocation5], 0  ;;  %s404_s12 = smov [#allocation6]   ;;  %s405_s14 = smov [#allocation3]  }
   0x3   :  { %s28_s13 = sshll.u32 %s404_s12, 4  ;;  %s16_s15 = sshll.u32 %s405_s14, 4  ;;  %s29_s13 = int_to_ptr.vmem [resolvable:$true] %s28_s13  ;;  %s433_s15 = int_to_ptr.vmem [resolvable:$true] %s16_s15 }
   0x4   :  { %s310_s18 = scalar_lea.hbm %s501_s1, 1024 }
   0x5   :  { %p311_p0 = scmp.ne.s32.totalorder %s501_s1, %s310_s18  ;;  %p314_p1 = scmp.lt.u32.totalorder %s310_s18, %s501_s1 }
   0x7   :  { %p316_p2 = pnand %p314_p1, %p311_p0 }
   0x9   :  { %319 = shalt.err (!%p316_p2)
}
   0xa   :  { %s320_s23 = scalar_lea.vmem %s29_s13, 1024  ;;  %p325_p4 = scmp.lt.s32.totalorder %s29_s13, %s29_s13 }
   0xb   :  { %p321_p3 = scmp.ne.s32.totalorder %s29_s13, %s320_s23  ;;  %p326_p5 = scmp.lt.s32.totalorder %s320_s23, %s320_s23 }
   0xd   :  { %p327_p6 = por %p326_p5, %p325_p4 }
   0xf   :  { %p328_p7 = pnand %p327_p6, %p321_p3 }
  0x11   :  { %331 = shalt.err (!%p328_p7)
}
  0x12   :  { %s406_s24 = smov 64   ;;  %s407_s25 = smov 4  }
  0x13   :  { %34 = dma.hbm_to_vmem [thread:$0]  %s501_s1, 1024, %s29_s13, [#allocation7], %s406_s24, %s406_s24, %s407_s25  }
  0x14   :  { %s332_s30 = scalar_lea.hbm %s500_s0, 256 }
  0x15   :  { %p333_p8 = scmp.ne.s32.totalorder %s500_s0, %s332_s30  ;;  %p336_p9 = scmp.lt.u32.totalorder %s332_s30, %s500_s0 }
  0x17   :  { %p338_p10 = pnand %p336_p9, %p333_p8 }
  0x19   :  { %341 = shalt.err (!%p338_p10)
}
  0x1a   :  { %s342_s8 = scalar_lea.vmem %s433_s15, 256  ;;  %p347_p12 = scmp.lt.s32.totalorder %s433_s15, %s433_s15 }
  0x1b   :  { %p343_p11 = scmp.ne.s32.totalorder %s433_s15, %s342_s8  ;;  %p348_p13 = scmp.lt.s32.totalorder %s342_s8, %s342_s8 }
  0x1d   :  { %p349_p0 = por %p348_p13, %p347_p12 }
  0x1f   :  { %p350_p1 = pnand %p349_p0, %p343_p11 }
  0x21   :  { %353 = shalt.err (!%p350_p1)
}
  0x22   :  { %22 = dma.hbm_to_vmem [thread:$0]  %s500_s0, 256, %s433_s15, [#allocation4], %s406_s24, %s406_s24, %s407_s25  }
  0x23   :  { %s408_s10 = smov [#allocation8]   ;;  %s354_s14 = scalar_lea.hbm %s502_s2, 16 }
  0x24   :  { %s41_s11 = sshll.u32 %s408_s10, 4  ;;  %p355_p2 = scmp.ne.s32.totalorder %s502_s2, %s354_s14  ;;  %s42_s11 = int_to_ptr.vmem [resolvable:$true] %s41_s11 }
  0x25   :  { %p358_p3 = scmp.lt.u32.totalorder %s354_s14, %s502_s2 }
  0x27   :  { %p360_p4 = pnand %p358_p3, %p355_p2 }
  0x29   :  { %363 = shalt.err (!%p360_p4)
}
  0x2a   :  { %s364_s20 = scalar_lea.vmem %s42_s11, 16  ;;  %s368_s0 = scalar_lea.vmem %s42_s11, 32 }
  0x2b   :  { %p365_p5 = scmp.ne.s32.totalorder %s42_s11, %s364_s20  ;;  %p369_p6 = scmp.lt.s32.totalorder %s42_s11, %s42_s11 }
  0x2c   :  { %p370_p7 = scmp.lt.s32.totalorder %s368_s0, %s364_s20 }
  0x2e   :  { %p371_p8 = por %p370_p7, %p369_p6 }
  0x30   :  { %p372_p9 = pnand %p371_p8, %p365_p5 }
  0x32   :  { %375 = shalt.err (!%p372_p9)
}
  0x33   :  { %44 = dma.hbm_to_vmem [thread:$0]  %s502_s2, 16, %s42_s11, [#allocation7]  }
  0x34   :  { %398 = dma.done.wait [#allocation4], 256  }
  0x35   :  { %399 = vsyncadd [#allocation4], 4294967040 }
  0x36   :  { %400 = dma.done.wait [#allocation7], 1040  }
  0x37   :  { %401 = vsyncadd [#allocation7], 4294966256  ;;  %vm59_vm0 = vcmask 261120   ;;  %v409_v0 = vmov 0.0   ;;  %v300_v1 = vld [vmem:[#allocation6] sm:$0xff]   ;;  %v301_v2 = vld [vmem:[#allocation6 + $0x8] sm:$0xff]  }
  0x38   :  { %62 = vst.msk [vmem:[#allocation2 + $0x10] sm:$0xff] %vm59_vm0, %v409_v0  ;;  %60 = vst.msk [vmem:[#allocation2] sm:$0xff] %vm59_vm0, %v409_v0  ;;  %271 = vmatprep.subr.bf16.mxu0 %v300_v1  ;;  %v302_v3 = vld [vmem:[#allocation6 + $0x10] sm:$0xff]   ;;  %v303_v4 = vld [vmem:[#allocation6 + $0x18] sm:$0xff]   ;;  %s410_s2 = smov [#allocation9]  }
  0x39   :  { %61 = vst.msk [vmem:[#allocation2 + $0x8] sm:$0xff] %vm59_vm0, %v409_v0  ;;  %63 = vst.msk [vmem:[#allocation2 + $0x18] sm:$0xff] %vm59_vm0, %v409_v0  ;;  %272 = vmatpush3.bf16.msra.mxu0 %v300_v1  ;;  %v308_v5 = vld [vmem:[#allocation3] sm:$0xff]   ;;  %v304_v6 = vld [vmem:[#allocation6 + $0x20] sm:$0xff]   ;;  %s237_s22 = sshll.u32 %s410_s2, 4  ;;  %s238_s22 = int_to_ptr.vmem [resolvable:$true] %s237_s22 }
  0x3a   :  { %273 = vmatprep.subr.bf16.mxu0 %v301_v2  ;;  %287 = vmatprep.mubr.bf16.mxu0 %v308_v5  ;;  %v305_v7 = vld [vmem:[#allocation6 + $0x28] sm:$0xff]   ;;  %v306_v8 = vld [vmem:[#allocation6 + $0x30] sm:$0xff]   ;;  %v307_v9 = vld [vmem:[#allocation6 + $0x38] sm:$0xff]   ;;  %s376_s23 = scalar_lea.vmem %s238_s22, 512  ;;  %p381_p11 = scmp.lt.s32.totalorder %s238_s22, %s238_s22 }
  0x3b   :  { %v309_v10 = vld [vmem:[#allocation3 + $0x8] sm:$0xff]   ;;  %v260_v23 = vld [vmem:[#allocation8] ss:$0 sm:$0xff]  ;;  %p377_p10 = scmp.ne.s32.totalorder %s238_s22, %s376_s23  ;;  %p382_p12 = scmp.lt.s32.totalorder %s376_s23, %s376_s23 }
  0x3d   :  { %274 = vmatpush3.bf16.msra.mxu0 %v301_v2  ;;  %p383_p13 = por %p382_p12, %p381_p11 }
  0x3e   :  { %275 = vmatprep.subr.bf16.mxu0 %v302_v3 }
  0x3f   :  { %v66_v11 = vld [vmem:[#allocation2 + $0x10] sm:$0xff]  ;;  %v64_v12 = vld [vmem:[#allocation2] sm:$0xff]  ;;  %p384_p0 = pnand %p383_p13, %p377_p10 }
  0x40   :  { %v67_v14 = vld [vmem:[#allocation2 + $0x18] sm:$0xff]  ;;  %v65_v17 = vld [vmem:[#allocation2 + $0x8] sm:$0xff] }
  0x41   :  { %276 = vmatpush3.bf16.msra.mxu0 %v302_v3 }
  0x42   :  { %277 = vmatprep.subr.bf16.mxu0 %v303_v4 }
  0x45   :  { %278 = vmatpush3.bf16.msra.mxu0 %v303_v4 }
  0x46   :  { %279 = vmatprep.subr.bf16.mxu0 %v304_v6 }
  0x49   :  { %280 = vmatpush3.bf16.msra.mxu0 %v304_v6 }
  0x4a   :  { %281 = vmatprep.subr.bf16.mxu0 %v305_v7 }
  0x4d   :  { %282 = vmatpush3.bf16.msra.mxu0 %v305_v7 }
  0x4e   :  { %283 = vmatprep.subr.bf16.mxu0 %v306_v8 }
  0x51   :  { %284 = vmatpush3.bf16.msra.mxu0 %v306_v8 }
  0x52   :  { %285 = vmatprep.subr.bf16.mxu0 %v307_v9 }
  0x55   :  { %286 = vmatpush3.bf16.msra.mxu0 %v307_v9 }
  0x58   :  { %288 = vmatmul.mubr.bf16.vlgmr.msra.gmra.mrb[0].mxu0 %v309_v10 }
 0x12b   :  { %v289_v13 = vpop.f32.mrb[0].mxu0 }
 0x12c   :  { %v199_v15 = vadd.f32 %v289_v13, %v66_v11  ;;  %v182_v16 = vpop.f32.mrb[1].mxu0 }
 0x12d   :  { %v197_v18 = vadd.f32 %v182_v16, %v64_v12  ;;  %v290_v19 = vpop.f32.mrb[2].mxu0 }
 0x12e   :  { %204 = vst.msk [vmem:[#allocation2 + $0x10] sm:$0xff] %vm59_vm0, %v199_v15  ;;  %v200_v20 = vadd.f32 %v290_v19, %v67_v14  ;;  %v185_v21 = vpop.f32.mrb[3].mxu0 }
 0x12f   :  { %202 = vst.msk [vmem:[#allocation2] sm:$0xff] %vm59_vm0, %v197_v18  ;;  %v198_v22 = vadd.f32 %v185_v21, %v65_v17 }
 0x130   :  { %205 = vst.msk [vmem:[#allocation2 + $0x18] sm:$0xff] %vm59_vm0, %v200_v20 }
 0x131   :  { %203 = vst.msk [vmem:[#allocation2 + $0x8] sm:$0xff] %vm59_vm0, %v198_v22 }
 0x135   :  { %v211_v24 = vld [vmem:[#allocation2 + $0x10] sm:$0xff] }
 0x136   :  { %v209_v25 = vld [vmem:[#allocation2] sm:$0xff]  ;;  %v222_v26 = vadd.f32 %v260_v23, %v211_v24 }
 0x137   :  { %v212_v27 = vld [vmem:[#allocation2 + $0x18] sm:$0xff]  ;;  %v220_v28 = vadd.f32 %v260_v23, %v209_v25 }
 0x138   :  { %v210_v29 = vld [vmem:[#allocation2 + $0x8] sm:$0xff]  ;;  %v223_v30 = vadd.f32 %v260_v23, %v212_v27  ;;  %v226_v31 = vmax.f32 %v222_v26, 0.0 }
 0x139   :  { %v221_v32 = vadd.f32 %v260_v23, %v210_v29  ;;  %v224_v33 = vmax.f32 %v220_v28, 0.0 }
 0x13a   :  { %v227_v34 = vmax.f32 %v223_v30, 0.0  ;;  %230 = vst.msk [vmem:[#allocation9 + $0x10] sm:$0xff] %vm59_vm0, %v226_v31 }
 0x13b   :  { %v225_v35 = vmax.f32 %v221_v32, 0.0  ;;  %228 = vst.msk [vmem:[#allocation9] sm:$0xff] %vm59_vm0, %v224_v33 }
 0x13c   :  { %231 = vst.msk [vmem:[#allocation9 + $0x18] sm:$0xff] %vm59_vm0, %v227_v34 }
 0x13d   :  { %229 = vst.msk [vmem:[#allocation9 + $0x8] sm:$0xff] %vm59_vm0, %v225_v35 }
 0x13e   :  { %387 = shalt.err (!%p384_p0)
}
 0x13f   :  { %s388_s26 = scalar_lea.hbm %s503_s3, 512 }
 0x140   :  { %p389_p1 = scmp.ne.s32.totalorder %s503_s3, %s388_s26  ;;  %p392_p2 = scmp.lt.u32.totalorder %s388_s26, %s503_s3 }
 0x142   :  { %p394_p3 = pnand %p392_p2, %p389_p1 }
 0x144   :  { %397 = shalt.err (!%p394_p3)
}
 0x145   :  { %s411_s4 = smov 128   ;;  %s412_s5 = smov 8  }
 0x146   :  { %243 = dma.vmem_to_hbm [thread:$0]  %s238_s22, 512, %s503_s3, [#allocation5], %s411_s4, %s411_s4, %s412_s5  }
 0x147   :  { %402 = dma.done.wait [#allocation5], 512  }
 0x148   :  { %403 = vsyncadd [#allocation5], 4294966784 }
 0x149   :  { %247 = vsyncpa [#allocation4], 1 }
 0x14a   :  { %248 = vsyncpa [#allocation7], 1 }
 0x14b   :  { %249 = vsyncpa [#allocation5], 1 }

</bundles_post_ra>
